<compile_context>
chip_gen: v5e
topology: v5e:2x2
jax: 0.10.0
libtpu: 0.0.40
codegen_flags: <defaults>
</compile_context>

<pallas_src>
import jax
import jax.numpy as jnp
from jax.experimental import pallas as pl
from jax.experimental.pallas import tpu as pltpu

_LANE = 128          # output last dim padded to a multiple of this (lane-dense vst)
_SUBLANE = 8         # row padding granularity (f32 sublane)
_DEFAULT_TM = 512    # row tile
_TK = 512            # K tile for the reduction path


def _round_up(x, m):
    return ((x + m - 1) // m) * m


def _vmem_ceiling_bytes():
    """Generation-aware usable scoped-VMEM budget (~3/4 of physical)."""
    try:
        phys = int(pltpu.get_tpu_info().vmem_capacity_bytes)
    except Exception:
        phys = 128 * 1024 * 1024
    return (phys * 3) // 4      # ~96 MiB on v5e/v6e, ~48 MiB on v7x


def _needs_k_tiling(k_pad, n_pad, w_itemsize):
    """K-tile when the (double-buffered) resident weight would eat >2/3 of VMEM."""
    return 2 * k_pad * n_pad * w_itemsize > (2 * _vmem_ceiling_bytes()) // 3


def prepare_linear_params(weight, bias, param_dtype=None):
    """One-time parameter prep (do NOT call per forward).

    weight: (d_output, d_input)  -- PyTorch nn.Linear convention
    bias:   (d_output,)
    param_dtype: optional storage dtype (e.g. jnp.bfloat16) for W/b.
    Returns (w_t_padded (k_pad, n_pad), bias_padded (1, n_pad)) with
    n_pad = round_up(d_output, 128), k_pad = round_up(d_input, 8) — further
    rounded to a multiple of _TK when the layer will need K-tiling.
    Padding is zero, so padded K/N contribute exactly nothing.
    """
    d_output, d_input = weight.shape
    dtype = jnp.dtype(param_dtype) if param_dtype is not None else jnp.dtype(weight.dtype)
    n_pad = _round_up(d_output, _LANE)
    k_pad = _round_up(d_input, _SUBLANE)
    if _needs_k_tiling(k_pad, n_pad, dtype.itemsize):
        k_pad = _round_up(k_pad, _TK)
    w_t = jnp.zeros((k_pad, n_pad), dtype).at[:d_input, :d_output].set(weight.T.astype(dtype))
    b2d = jnp.zeros((1, n_pad), dtype).at[0, :d_output].set(bias.astype(dtype))
    return w_t, b2d


def _slp_kernel_resident(x_ref, w_ref, b_ref, o_ref):
    # Path A: W fully resident; one MXU matmul per row tile + bias add.
    x = x_ref[...]
    if x.dtype != w_ref.dtype:
        x = x.astype(w_ref.dtype)          # e.g. f32 activations, bf16 weights
    acc = jnp.dot(x, w_ref[...], preferred_element_type=jnp.float32)
    o_ref[...] = (acc + b_ref[...].astype(jnp.float32)).astype(o_ref.dtype)


def _slp_kernel_ktiled(x_ref, w_ref, b_ref, o_ref, acc_ref):
    # Path B: (M, K) grid, f32 accumulator resident across the K axis.
    k = pl.program_id(1)

    @pl.when(k == 0)
    def _():
        acc_ref[...] = jnp.zeros_like(acc_ref)

    x = x_ref[...]
    if x.dtype != w_ref.dtype:
        x = x.astype(w_ref.dtype)
    acc_ref[...] += jnp.dot(x, w_ref[...], preferred_element_type=jnp.float32)

    @pl.when(k == pl.num_programs(1) - 1)
    def _():
        o_ref[...] = (acc_ref[...] + b_ref[...].astype(jnp.float32)).astype(o_ref.dtype)


def single_layer_perceptron(x, w_t_padded, bias_padded, d_output,
                            tm=_DEFAULT_TM, keep_padded_output=False,
                            core_parallel=False):
    """Equivalent of torch.nn.Linear(d_input, d_output)(x).

    x:            (..., d_input)
    w_t_padded:   (k_pad, n_pad)  from prepare_linear_params
    bias_padded:  (1, n_pad)      from prepare_linear_params
    keep_padded_output=True returns the raw (m_pad, n_pad) lane-padded slab
      (avoids the slice/reshape HBM pass when chaining padded layers).
    core_parallel=True marks the M-tile axis pltpu.CORE_PARALLEL (v7x 2-TC sharding).
    """
    k_pad, n_pad = w_t_padded.shape
    d_input = x.shape[-1]
    lead_shape = x.shape[:-1]

    x2d = x.reshape(-1, d_input)
    m = x2d.shape[0]
    m_pad = _round_up(max(m, 1), _SUBLANE)      # sublane alignment only (<=7 pad rows)

    pad_rows = m_pad - m
    pad_cols = k_pad - d_input                  # zero K padding keeps the dot exact
    if pad_rows or pad_cols:
        x2d = jnp.pad(x2d, ((0, pad_rows), (0, pad_cols)))

    x_isz = jnp.dtype(x2d.dtype).itemsize
    w_isz = jnp.dtype(w_t_padded.dtype).itemsize
    o_isz = x_isz
    vmem_ceiling = _vmem_ceiling_bytes()

    m_sem = pltpu.CORE_PARALLEL if core_parallel else "parallel"
    # TODO(synk): consider making core_parallel the default once v7x detection is robust.

    if not _needs_k_tiling(k_pad, n_pad, w_isz):
        # ---------- Path A: M-only tiling, W + bias resident in VMEM ----------
        def est(tm_):
            return (2 * tm_ * k_pad * x_isz        # x tiles   (double-buffered)
                    + 2 * tm_ * n_pad * o_isz      # out tiles (double-buffered)
                    + 2 * k_pad * n_pad * w_isz    # W: 2 pipeline buffers even though invariant
                    + 2 * n_pad * w_isz)           # bias: 2 pipeline buffers

        tm_eff = min(tm, m_pad)                    # both multiples of 8
        while est(tm_eff) > vmem_ceiling and tm_eff > _SUBLANE:
            tm_eff = max(_SUBLANE, _round_up(tm_eff // 2, _SUBLANE))

        grid = (pl.cdiv(m_pad, tm_eff),)           # partial last tile masked by Pallas
        vmem_limit = min(max(int(est(tm_eff) * 1.25), 16 * 1024 * 1024), vmem_ceiling)

        out = pl.pallas_call(
            _slp_kernel_resident,
            out_shape=jax.ShapeDtypeStruct((m_pad, n_pad), x.dtype),
            grid_spec=pltpu.PrefetchScalarGridSpec(
                num_scalar_prefetch=0,
                grid=grid,
                in_specs=[
                    pl.BlockSpec((tm_eff, k_pad), lambda i: (i, 0)),   # row tile
                    pl.BlockSpec((k_pad, n_pad), lambda i: (0, 0)),    # W resident
                    pl.BlockSpec((1, n_pad), lambda i: (0, 0)),        # bias resident
                ],
                out_specs=pl.BlockSpec((tm_eff, n_pad), lambda i: (i, 0)),
            ),
            compiler_params=pltpu.CompilerParams(
                dimension_semantics=(m_sem,),
                vmem_limit_bytes=int(vmem_limit),
            ),
        )(x2d, w_t_padded, bias_padded)
    else:
        # ---------- Path B: (M, K) tiling with f32 accumulator (big weights) ----------
        tk_eff = min(_TK, k_pad)
        assert k_pad % tk_eff == 0, (
            "K-tiled path requires k_pad % {} == 0; use prepare_linear_params".format(_TK))
        nk = k_pad // tk_eff

        def est(tm_):
            return (2 * tm_ * tk_eff * x_isz       # x tiles
                    + 2 * tk_eff * n_pad * w_isz   # W tiles
                    + 2 * tm_ * n_pad * o_isz      # out tiles
                    + 2 * n_pad * w_isz            # bias
                    + tm_ * n_pad * 4)             # f32 accumulator scratch

        tm_eff = min(tm, m_pad)
        while est(tm_eff) > vmem_ceiling and tm_eff > _SUBLANE:
            tm_eff = max(_SUBLANE, _round_up(tm_eff // 2, _SUBLANE))

        grid = (pl.cdiv(m_pad, tm_eff), nk)        # reduction axis last
        vmem_limit = min(max(int(est(tm_eff) * 1.25), 16 * 1024 * 1024), vmem_ceiling)

        out = pl.pallas_call(
            _slp_kernel_ktiled,
            out_shape=jax.ShapeDtypeStruct((m_pad, n_pad), x.dtype),
            grid_spec=pltpu.PrefetchScalarGridSpec(
                num_scalar_prefetch=0,
                grid=grid,
                in_specs=[
                    pl.BlockSpec((tm_eff, tk_eff), lambda i, k: (i, k)),
                    pl.BlockSpec((tk_eff, n_pad), lambda i, k: (k, 0)),
                    pl.BlockSpec((1, n_pad), lambda i, k: (0, 0)),
                ],
                out_specs=pl.BlockSpec((tm_eff, n_pad), lambda i, k: (i, 0)),
                scratch_shapes=[pltpu.VMEM((tm_eff, n_pad), jnp.float32)],
            ),
            compiler_params=pltpu.CompilerParams(
                dimension_semantics=(m_sem, "arbitrary"),
                vmem_limit_bytes=int(vmem_limit),
            ),
        )(x2d, w_t_padded, bias_padded)

    if keep_padded_output:
        return out                                  # (m_pad, n_pad) lane-padded slab

    if m_pad != m or n_pad != d_output:
        out = out[:m, :d_output]
    return out.reshape(*lead_shape, d_output)


if __name__ == "__main__":
    # Small shapes consistent with the module's forward: x: (batch, seq, d_input)
    batch, seq, d_input, d_output = 2, 8, 32, 64

    key = jax.random.PRNGKey(0)
    kx, kw, kb, kx2 = jax.random.split(key, 4)

    x = jax.random.normal(kx, (batch, seq, d_input), dtype=jnp.float32)

    # Deterministic init mimicking nn.Linear's U(-1/sqrt(d_in), 1/sqrt(d_in))
    bound = 1.0 / jnp.sqrt(jnp.float32(d_input))
    weight = jax.random.uniform(kw, (d_output, d_input), jnp.float32, -bound, bound)
    bias = jax.random.uniform(kb, (d_output,), jnp.float32, -bound, bound)

    y_ref = x @ weight.T + bias

    # f32 parameters (exact match to the reference).
    w_t, b2d = prepare_linear_params(weight, bias)
    y = jax.block_until_ready(single_layer_perceptron(x, w_t, b2d, d_output))
    assert y.shape == (batch, seq, d_output)
    assert jnp.allclose(y, y_ref, atol=1e-5, rtol=1e-5)

    # bf16 parameter storage (fast MXU path); looser tolerance.
    w_bf, b_bf = prepare_linear_params(weight, bias, param_dtype=jnp.bfloat16)
    y_bf = jax.block_until_ready(single_layer_perceptron(x, w_bf, b_bf, d_output))
    assert jnp.allclose(y_bf, y_ref, atol=5e-2, rtol=5e-2)

    # Multi-tile grid with a partial last tile and non-multiple-of-8 M
    # (exercises the cdiv-based grid; M padded only to the sublane boundary).
    x_big = jax.random.normal(kx2, (3, 300, d_input), dtype=jnp.float32)   # M = 900
    y_big = jax.block_until_ready(single_layer_perceptron(x_big, w_t, b2d, d_output))
    y_big_ref = x_big @ weight.T + bias
    assert y_big.shape == (3, 300, d_output)
    assert jnp.allclose(y_big, y_big_ref, atol=1e-5, rtol=1e-5)

    print("KERNEL_OK")
</pallas_src>

<mosaic_0001>
module attributes {stable_mosaic.version = 11 : i64} {
  func.func @_slp_kernel_resident(%arg0: i32, %arg1: memref<16x32xf32, #tpu.memory_space<vmem>>, %arg2: memref<32x128xf32, #tpu.memory_space<vmem>>, %arg3: memref<1x128xf32, #tpu.memory_space<vmem>>, %arg4: memref<16x128xf32, #tpu.memory_space<vmem>>) attributes {dimension_semantics = [#tpu.dimension_semantics<parallel>], iteration_bounds = array<i64: 1>, scalar_prefetch = 0 : i64, scratch_operands = 0 : i64, tpu.core_type = #tpu.core_type<tc>, window_params = [{transform_indices = @transform_0, window_bounds = array<i64: 16, 32>}, {pipeline_mode = #tpu.pipeline_mode<synchronous>, transform_indices = @transform_1, window_bounds = array<i64: 32, 128>}, {pipeline_mode = #tpu.pipeline_mode<synchronous>, transform_indices = @transform_2, window_bounds = array<i64: 1, 128>}, {transform_indices = @transform_3, window_bounds = array<i64: 16, 128>}]} {
    %c0 = arith.constant 0 : index
    %c0_0 = arith.constant 0 : index
    %0 = vector.load %arg1[%c0, %c0_0] : memref<16x32xf32, #tpu.memory_space<vmem>>, vector<16x32xf32>
    %c0_1 = arith.constant 0 : index
    %c0_2 = arith.constant 0 : index
    %1 = vector.load %arg2[%c0_1, %c0_2] : memref<32x128xf32, #tpu.memory_space<vmem>>, vector<32x128xf32>
    %cst = arith.constant dense<0.000000e+00> : vector<16x128xf32>
    %2 = tpu.matmul %0, %1, %cst {dimension_numbers = #tpu.dot_dimension_numbers<[1], [0], [0], [1], [0, 0, 1, 1], [], []>} : vector<16x32xf32>, vector<32x128xf32>, vector<16x128xf32> -> vector<16x128xf32>
    %c0_3 = arith.constant 0 : index
    %c0_4 = arith.constant 0 : index
    %3 = vector.load %arg3[%c0_3, %c0_4] : memref<1x128xf32, #tpu.memory_space<vmem>>, vector<1x128xf32>
    %4 = vector.broadcast %3 : vector<1x128xf32> to vector<16x128xf32>
    %5 = arith.addf %2, %4 : vector<16x128xf32>
    %c0_5 = arith.constant 0 : index
    %c0_6 = arith.constant 0 : index
    %6 = vector.load %arg4[%c0_5, %c0_6] : memref<16x128xf32, #tpu.memory_space<vmem>>, vector<16x128xf32>
    tpu.vector_store %arg4[%c0_5, %c0_6], %5 {strides = array<i32>} : memref<16x128xf32, #tpu.memory_space<vmem>>, vector<16x128xf32>,
    return
  }
  func.func @transform_0(%arg0: i32) -> (i32, i32) {
    %c0_i32 = arith.constant 0 : i32
    %c0_i32_0 = arith.constant 0 : i32
    return %arg0, %c0_i32 : i32, i32
  }
  func.func @transform_1(%arg0: i32) -> (i32, i32) {
    %c0_i32 = arith.constant 0 : i32
    %c0_i32_0 = arith.constant 0 : i32
    %c0_i32_1 = arith.constant 0 : i32
    return %c0_i32, %c0_i32_0 : i32, i32
  }
  func.func @transform_2(%arg0: i32) -> (i32, i32) {
    %c0_i32 = arith.constant 0 : i32
    %c0_i32_0 = arith.constant 0 : i32
    %c0_i32_1 = arith.constant 0 : i32
    return %c0_i32, %c0_i32_0 : i32, i32
  }
  func.func @transform_3(%arg0: i32) -> (i32, i32) {
    %c0_i32 = arith.constant 0 : i32
    %c0_i32_0 = arith.constant 0 : i32
    return %arg0, %c0_i32 : i32, i32
  }
}

</mosaic_0001>

<bundles_post_ra>
// kernel: tpu_custom_call.1
= control target key start
LH: loop header
LB: loop body
LE: loop exit
PB: predicated region body
PF: predicated region fallthrough
CT: control target
= control target key end

     0   :  { %8 = vsyncpa [#allocation3], 0  ;;  %s245_s0 = inlined_call_operand.hbm [shape: f32[16,32], index: 0, kind: input, shape index: {}]   ;;  %s246_s1 = inlined_call_operand.hbm [shape: f32[32,128], index: 1, kind: input, shape index: {}]   ;;  %s247_s2 = inlined_call_operand.vmem [shape: f32[1,128], index: 2, kind: input, shape index: {}]   ;;  %s248_s3 = inlined_call_operand.hbm [shape: f32[16,128], index: 3, kind: output, shape index: {}]  }
   0x1   :  { %9 = vsyncpa [#allocation6], 0 }
   0x2   :  { %10 = vsyncpa [#allocation4], 0  ;;  %s15_s14 = sshll.u32 %s245_s0, 4  ;;  %s199_s15 = smov [#allocation2]   ;;  %s16_s14 = int_to_ptr.hbm [resolvable:$true] %s15_s14 }
   0x3   :  { %s17_s16 = sshll.u32 %s199_s15, 4  ;;  %s28_s19 = sshll.u32 %s246_s1, 4  ;;  %s18_s16 = int_to_ptr.vmem [resolvable:$true] %s17_s16  ;;  %s29_s19 = int_to_ptr.hbm [resolvable:$true] %s28_s19 }
   0x4   :  { %s200_s20 = smov 128   ;;  %s201_s21 = smov 8  }
   0x5   :  { %23 = dma.hbm_to_vmem [thread:$0]  %s16_s14, 256, %s18_s16, [#allocation3], %s200_s20, %s200_s20, %s201_s21  }
   0x6   :  { %s202_s22 = smov [#allocation5]  }
   0x7   :  { %s30_s23 = sshll.u32 %s202_s22, 4  ;;  %s31_s23 = int_to_ptr.vmem [resolvable:$true] %s30_s23 }
   0x8   :  { %36 = dma.hbm_to_vmem [thread:$0]  %s29_s19, 512, %s31_s23, [#allocation6], %s200_s20, %s200_s20, %s201_s21  }
   0x9   :  { %193 = dma.done.wait [#allocation3], 256  }
   0xa   :  { %194 = vsyncadd [#allocation3], 4294967040 }
   0xb   :  { %195 = dma.done.wait [#allocation6], 512  }
   0xc   :  { %196 = vsyncadd [#allocation6], 4294966784  ;;  %v52_v0 = vld [vmem:[#allocation5 + $0x18] sm:$0xff]  ;;  %v51_v1 = vld [vmem:[#allocation5 + $0x10] sm:$0xff]  ;;  %vm57_vm0 = vcmask 261120   ;;  %s203_s24 = smov [#allocation7]  }
   0xd   :  { %76 = vmatpush.msra.mxu0 %v52_v0  ;;  %111 = vmatpush.msra.mxu1 %v52_v0  ;;  %v50_v2 = vld [vmem:[#allocation5 + $0x8] sm:$0xff]  ;;  %v49_v3 = vld [vmem:[#allocation5] sm:$0xff]  ;;  %v47_v4 = vld [vmem:[#allocation2] sm:$0xff]  ;;  %s93_s25 = sshll.u32 %s203_s24, 4  ;;  %s95_s28 = sshll.u32 %s248_s3, 4  ;;  %s94_s25 = int_to_ptr.vmem [resolvable:$true] %s93_s25  ;;  %s96_s28 = int_to_ptr.hbm [resolvable:$true] %s95_s28 }
   0xe   :  { %v48_v5 = vld [vmem:[#allocation2 + $0x8] sm:$0xff]  ;;  %v120_v6 = vld [vmem:[%s247_s2] ss:$0 sm:$0xff] }
   0xf   :  { %77 = vmatpush.msra.mxu0 %v51_v1  ;;  %112 = vmatpush.msra.mxu1 %v51_v1 }
  0x11   :  { %78 = vmatpush.msra.mxu0 %v50_v2  ;;  %113 = vmatpush.msra.mxu1 %v50_v2 }
  0x13   :  { %79 = vmatpush.msra.mxu0 %v49_v3  ;;  %114 = vmatpush.msra.mxu1 %v49_v3 }
  0x14   :  { %109 = vmatmul.msk.f32.vlgmr.msra.gmra.mxu0 %vm57_vm0, %v47_v4  ;;  %110 = vmatmul.msk.f32.vlgmr.msra.gmra.mxu1 %vm57_vm0, %v48_v5 }
  0x91   :  { %v81_v7 = vpop.f32.mrf.mxu0  ;;  %v84_v8 = vpop.f32.mrf.mxu1 }
  0x92   :  { %v82_v9 = vadd.f32 %v120_v6, %v81_v7  ;;  %v85_v10 = vadd.f32 %v120_v6, %v84_v8 }
  0x94   :  { %87 = vst [vmem:[#allocation7] sm:$0xff] %v82_v9 }
  0x95   :  { %88 = vst [vmem:[#allocation7 + $0x8] sm:$0xff] %v85_v10 }
  0x96   :  { %101 = dma.vmem_to_hbm [thread:$0]  %s94_s25, 256, %s96_s28, [#allocation4], %s200_s20, %s200_s20, %s201_s21  }
  0x97   :  { %197 = dma.done.wait [#allocation4], 256  }
  0x98   :  { %198 = vsyncadd [#allocation4], 4294967040 }
  0x99   :  { %106 = vsyncpa [#allocation3], 1 }
  0x9a   :  { %107 = vsyncpa [#allocation6], 1 }
  0x9b   :  { %108 = vsyncpa [#allocation4], 1 }

</bundles_post_ra>
